<compile_context>
chip_gen: v5e
topology: v5e:2x2
jax: 0.10.0
libtpu: 0.0.40
codegen_flags: <defaults>
</compile_context>

<pallas_src>
import functools

import jax
import jax.numpy as jnp
from jax import lax
from jax.experimental import pallas as pl
from jax.experimental.pallas import tpu as pltpu


_BUF_CAP_BYTES = 4 * 1024 * 1024   # per input buffer; x2 when double-buffered
_MAX_ROW_TILE = 4096               # sublane rows per grid step
_MAX_LANE_TILE = 4096              # lanes per grid step on the multi-step path


def _int_pow(x, n):
    """x ** n for a static positive integer n via repeated squaring (VPU only)."""
    assert n >= 1
    result = None
    base = x
    while n:
        if n & 1:
            result = base if result is None else result * base
        n >>= 1
        if n:
            base = base * base
    return result


def _pow_p(xc, p_ref, static_p):
    if static_p is not None:
        return _int_pow(xc, static_p)          # VPU fast path
    # runtime p: x**p = exp(p * log(x)) -> 2 EUP transcendentals / element
    return jnp.exp(p_ref[0] * jnp.log(xc))


def _inv_p(p_ref, static_p):
    if static_p is not None:
        return 1.0 / float(static_p)
    return 1.0 / p_ref[0]


def _gem_kernel_single(p_ref, x_ref, o_ref, *, eps, hw, static_p):
    # One grid step covers the whole spatial extent: no accumulator, no mask.
    x = x_ref[...].astype(jnp.float32)         # upcast is free vs. HBM DMA
    xc = jnp.maximum(x, eps)                   # clamp(min=eps) -> xc > 0
    xp = _pow_p(xc, p_ref, static_p)
    m = jnp.sum(xp, axis=-1, keepdims=True) * (1.0 / hw)
    # m ** (1/p): only `rows` elements, so exp/log here is negligible.
    o_ref[...] = jnp.exp(jnp.log(m) * _inv_p(p_ref, static_p)).astype(o_ref.dtype)


def _gem_kernel_multi(p_ref, x_ref, o_ref, acc_ref, *, eps, hw, tk, static_p,
                      ragged):
    # Huge-H*W path: spatial reduction axis is the LAST grid dim, accumulator
    # resident in VMEM scratch across it.
    k = pl.program_id(1)
    nk = pl.num_programs(1)

    @pl.when(k == 0)
    def _():
        acc_ref[...] = jnp.zeros_like(acc_ref)

    x = x_ref[...].astype(jnp.float32)
    xc = jnp.maximum(x, eps)
    xp = _pow_p(xc, p_ref, static_p)

    if ragged:
        # Only the last k tile hangs over the true H*W; mask it there only so
        # the iota/compare/select stays off the steady-state critical path.
        @pl.when(k < nk - 1)
        def _():
            acc_ref[...] += jnp.sum(xp, axis=-1, keepdims=True)

        @pl.when(k == nk - 1)
        def _():
            lane = k * tk + lax.broadcasted_iota(jnp.int32, xp.shape, 1)
            acc_ref[...] += jnp.sum(jnp.where(lane < hw, xp, 0.0),
                                    axis=-1, keepdims=True)
    else:
        acc_ref[...] += jnp.sum(xp, axis=-1, keepdims=True)

    @pl.when(k == nk - 1)
    def _():
        m = acc_ref[...] * (1.0 / hw)          # mean over the TRUE H*W
        o_ref[...] = jnp.exp(jnp.log(m) * _inv_p(p_ref, static_p)).astype(o_ref.dtype)


def _pick_row_tile(n_rows, lane_block, itemsize):
    """Rows per step: big (VMEM-capped), multiple of 8 (or full extent), and
    preferring an exact divisor of n_rows so no partial row block is needed."""
    cap = (_BUF_CAP_BYTES // max(1, lane_block * itemsize)) // 8 * 8
    cap = int(min(max(cap, 8), _MAX_ROW_TILE))
    if n_rows <= cap:
        tr = n_rows                            # full row extent (always legal)
    elif n_rows % 8 == 0:
        tr = 8
        for d in range(cap, 7, -8):            # largest mult-of-8 divisor <= cap
            if n_rows % d == 0:
                tr = d
                break
        if tr * 4 < cap:                       # only tiny divisors exist:
            tr = cap                           # accept one partial last block
    else:
        tr = cap                               # partial last block; extra rows
                                               # are sliced off in the wrapper
    # Keep >= 2 row tiles when possible so v7x's two TensorCores both get work.
    if tr == n_rows and n_rows >= 16 and (n_rows // 2) % 8 == 0:
        tr = n_rows // 2
    return tr


def gem_pallas(x, p, eps=1e-6, static_p=None):
    """GeM pooling. x: (N, C, H, W); p: (1,) learnable exponent.

    Returns (N, C, 1, 1) in x.dtype. If `static_p` is an int matching the
    runtime value of p, clamp**p uses repeated VPU multiplies instead of
    exp/log (recommended on v7x where the EUP binds before HBM).
    """
    N, C, H, W = x.shape
    R, HW = N * C, H * W
    itemsize = jnp.dtype(x.dtype).itemsize
    x2 = x.reshape(R, HW)                      # no pad; lane block = full HW below
    p_arr = jnp.asarray(p, jnp.float32).reshape(1)

    single = 8 * HW * itemsize <= _BUF_CAP_BYTES   # an 8-row full-HW tile fits

    if single:
        tr = _pick_row_tile(R, HW, itemsize)
        grid_r = pl.cdiv(R, tr)
        kernel = functools.partial(_gem_kernel_single, eps=float(eps), hw=HW,
                                   static_p=static_p)
        # NOTE: (tr, 1) output lowers to masked narrow stores; output volume is
        # R*4 bytes so the lane-dense-output rework is intentionally skipped.
        out = pl.pallas_call(
            kernel,
            out_shape=jax.ShapeDtypeStruct((grid_r * tr, 1), x.dtype),
            grid_spec=pltpu.PrefetchScalarGridSpec(
                num_scalar_prefetch=1,                        # p -> SMEM
                grid=(grid_r,),
                in_specs=[pl.BlockSpec((tr, HW), lambda i, p_ref: (i, 0))],
                out_specs=pl.BlockSpec((tr, 1), lambda i, p_ref: (i, 0)),
            ),
            compiler_params=pltpu.CompilerParams(
                dimension_semantics=("parallel",)),
        )(p_arr, x2)
    else:
        tk = _MAX_LANE_TILE
        grid_k = pl.cdiv(HW, tk)
        ragged = (HW % tk) != 0
        tr = _pick_row_tile(R, tk, itemsize)
        grid_r = pl.cdiv(R, tr)
        kernel = functools.partial(_gem_kernel_multi, eps=float(eps), hw=HW,
                                   tk=tk, static_p=static_p, ragged=ragged)
        out = pl.pallas_call(
            kernel,
            out_shape=jax.ShapeDtypeStruct((grid_r * tr, 1), x.dtype),
            grid_spec=pltpu.PrefetchScalarGridSpec(
                num_scalar_prefetch=1,
                grid=(grid_r, grid_k),                        # reduction axis LAST
                in_specs=[pl.BlockSpec((tr, tk), lambda i, k, p_ref: (i, k))],
                out_specs=pl.BlockSpec((tr, 1), lambda i, k, p_ref: (i, 0)),
                scratch_shapes=[pltpu.VMEM((tr, 1), jnp.float32)],
            ),
            compiler_params=pltpu.CompilerParams(
                dimension_semantics=("parallel", "arbitrary")),
        )(p_arr, x2)

    return out[:R, 0].reshape(N, C, 1, 1)


if __name__ == "__main__":
    key = jax.random.PRNGKey(0)
    eps = 1e-6
    # Deterministic parameter init matching GeM.__init__: p = ones(1) * 3
    p = jnp.ones((1,), dtype=jnp.float32) * 3.0

    def ref_gem(xx):
        return jnp.mean(jnp.maximum(xx, eps) ** p[0], axis=(-2, -1),
                        keepdims=True) ** (1.0 / p[0])

    # Main shape.
    N, C, H, W = 2, 4, 16, 16
    x = jax.random.normal(key, (N, C, H, W), dtype=jnp.float32)

    out = gem_pallas(x, p, eps)                 # runtime-p path (module semantics)
    jax.block_until_ready(out)
    ref = ref_gem(x)
    assert out.shape == (N, C, 1, 1)
    assert jnp.allclose(out, ref, atol=1e-5, rtol=1e-5)

    out_fast = gem_pallas(x, p, eps, static_p=3)  # integer-p VPU fast path
    jax.block_until_ready(out_fast)
    assert jnp.allclose(out_fast, ref, atol=1e-5, rtol=1e-5)

    # Typical CNN-backbone GeM shape: H*W = 7*7 = 49 (not a multiple of 128),
    # handled with a full-extent lane block and zero padding/copies.
    x2 = jax.random.normal(jax.random.PRNGKey(1), (2, 8, 7, 7), dtype=jnp.float32)
    out2 = gem_pallas(x2, p, eps)
    jax.block_until_ready(out2)
    assert out2.shape == (2, 8, 1, 1)
    assert jnp.allclose(out2, ref_gem(x2), atol=1e-5, rtol=1e-5)

    print("KERNEL_OK")
</pallas_src>

<mosaic_0001>
module attributes {stable_mosaic.version = 11 : i64} {
  func.func @_gem_kernel_single(%arg0: i32, %arg1: memref<1xf32, #tpu.memory_space<smem>>, %arg2: memref<8x256xf32, #tpu.memory_space<vmem>>, %arg3: memref<8x1xf32, #tpu.memory_space<vmem>>) attributes {dimension_semantics = [#tpu.dimension_semantics<parallel>], iteration_bounds = array<i64: 1>, scalar_prefetch = 1 : i64, scratch_operands = 0 : i64, tpu.core_type = #tpu.core_type<tc>, window_params = [{transform_indices = @transform_0, window_bounds = array<i64: 8, 256>}, {transform_indices = @transform_1, window_bounds = array<i64: 8, 1>}]} {
    %c0 = arith.constant 0 : index
    %c0_0 = arith.constant 0 : index
    %0 = vector.load %arg2[%c0, %c0_0] : memref<8x256xf32, #tpu.memory_space<vmem>>, vector<8x256xf32>
    %cst = arith.constant 9.99999997E-7 : f32
    %1 = vector.broadcast %cst : f32 to vector<8x256xf32>
    %2 = arith.maximumf %0, %1 : vector<8x256xf32>
    %c0_1 = arith.constant 0 : index
    %3 = memref.load %arg1[%c0_1] : memref<1xf32, #tpu.memory_space<smem>>
    %4 = math.log %2 : vector<8x256xf32>
    %5 = vector.broadcast %3 : f32 to vector<8x256xf32>
    %6 = arith.mulf %5, %4 : vector<8x256xf32>
    %7 = math.exp %6 : vector<8x256xf32>
    %cst_2 = arith.constant dense<0.000000e+00> : vector<8xf32>
    %8 = vector.multi_reduction <add>, %7, %cst_2 [1] : vector<8x256xf32> to vector<8xf32>
    %9 = vector.shape_cast %8 : vector<8xf32> to vector<8x1xf32>
    %cst_3 = arith.constant 3.906250e-03 : f32
    %10 = vector.broadcast %cst_3 : f32 to vector<8x1xf32>
    %11 = arith.mulf %9, %10 : vector<8x1xf32>
    %12 = math.log %11 : vector<8x1xf32>
    %c0_4 = arith.constant 0 : index
    %13 = memref.load %arg1[%c0_4] : memref<1xf32, #tpu.memory_space<smem>>
    %cst_5 = arith.constant 1.000000e+00 : f32
    %14 = arith.divf %cst_5, %13 : f32
    %15 = vector.broadcast %14 : f32 to vector<8x1xf32>
    %16 = arith.mulf %12, %15 : vector<8x1xf32>
    %17 = math.exp %16 : vector<8x1xf32>
    %c0_6 = arith.constant 0 : index
    %c0_7 = arith.constant 0 : index
    %18 = vector.load %arg3[%c0_6, %c0_7] : memref<8x1xf32, #tpu.memory_space<vmem>>, vector<8x1xf32>
    tpu.vector_store %arg3[%c0_6, %c0_7], %17 {strides = array<i32>} : memref<8x1xf32, #tpu.memory_space<vmem>>, vector<8x1xf32>,
    return
  }
  func.func @transform_0(%arg0: i32, %arg1: memref<1xf32, #tpu.memory_space<smem>>) -> (i32, i32) {
    %c0_i32 = arith.constant 0 : i32
    %c0_i32_0 = arith.constant 0 : i32
    return %arg0, %c0_i32 : i32, i32
  }
  func.func @transform_1(%arg0: i32, %arg1: memref<1xf32, #tpu.memory_space<smem>>) -> (i32, i32) {
    %c0_i32 = arith.constant 0 : i32
    %c0_i32_0 = arith.constant 0 : i32
    return %arg0, %c0_i32 : i32, i32
  }
}

</mosaic_0001>

<bundles_post_ra>
// kernel: tpu_custom_call.1
= control target key start
LH: loop header
LB: loop body
LE: loop exit
PB: predicated region body
PF: predicated region fallthrough
CT: control target
= control target key end

     0   :  { %8 = vsyncpa [#allocation5], 0  ;;  %s116_s12 = smov [#allocation4]   ;;  %s141_s0 = inlined_call_operand.<no memory space> [shape: f32[1], index: 0, kind: input, shape index: {}]   ;;  %s142_s1 = inlined_call_operand.hbm [shape: f32[8,256], index: 1, kind: input, shape index: {}]   ;;  %s143_s2 = inlined_call_operand.vmem [shape: f32[8,1], index: 2, kind: output, shape index: {}]  }
   0x1   :  { %s14_s11 = sshll.u32 %s142_s1, 4  ;;  %s16_s13 = sshll.u32 %s116_s12, 4  ;;  %s15_s11 = int_to_ptr.hbm [resolvable:$true] %s14_s11  ;;  %s17_s13 = int_to_ptr.vmem [resolvable:$true] %s16_s13 }
   0x2   :  { %19 = dma.hbm_to_vmem [thread:$0]  %s15_s11, 256, %s17_s13, [#allocation5]  }
   0x3   :  { %114 = dma.done.wait [#allocation5], 256  }
   0x4   :  { %115 = vsyncadd [#allocation5], 4294967040  ;;  %v33_v0 = vstv %s141_s0  ;;  %v24_v2 = vld [vmem:[#allocation4] sm:$0xff]  ;;  %v25_v3 = vld [vmem:[#allocation4 + $0x8] sm:$0xff]  ;;  %vm66_vm4 = vcmask 7168  }
   0x5   :  { %76 = vrcp.f32 %v33_v0  ;;  %v26_v4 = vmax.f32 %v24_v2, 1e-06  ;;  %v27_v5 = vmax.f32 %v25_v3, 1e-06  ;;  %vm52_vm0 = vweird.f32 %v33_v0 }
   0x6   :  { %v58_v7 = vand.u32 2147483648, %v33_v0  ;;  %v56_v9 = vand.u32 2147483647, %v33_v0 }
   0x7   :  { %78 = vlog2.f32 %v26_v4 }
   0x8   :  { %80 = vlog2.f32 %v27_v5  ;;  %v59_v11 = vor.u32 1.1754944e-38, %v58_v7  ;;  %vm57_vm3 = vcmp.eq.f32.partialorder %v56_v9, 8.507059e+37 }
   0xb   :  { %v77_v1 = vpop.eup %76 }
   0xc   :  { %v48_v6 = vmul.f32 %v77_v1, %v33_v0  ;;  %vm53_vm1 = vweird.f32 %v77_v1 }
   0xd   :  { %vm54_vm2 = vmor %vm52_vm0, %vm53_vm1  ;;  %v79_v13 = vpop.eup %78 }
   0xe   :  { %v49_v8 = vsub.f32 1.0, %v48_v6  ;;  %v81_v15 = vpop.eup %80  ;;  %v30_v16 = vmul.f32 0.6931472, %v79_v13 }
   0xf   :  { %v32_v18 = vmul.f32 0.6931472, %v81_v15 }
  0x10   :  { %v50_v10 = vmul.f32 %v77_v1, %v49_v8  ;;  %v34_v19 = vmul.f32 %v33_v0, %v30_v16 }
  0x11   :  { %v35_v20 = vmul.f32 %v33_v0, %v32_v18 }
  0x12   :  { %v51_v12 = vadd.f32 %v77_v1, %v50_v10  ;;  %v36_v21 = vmul.f32 1.442695, %v34_v19 }
  0x13   :  { %v38_v22 = vmul.f32 1.442695, %v35_v20 }
  0x14   :  { %v55_v14 = vsel %vm54_vm2, %v77_v1, %v51_v12  ;;  %82 = vpow2.f32 %v36_v21 }
  0x15   :  { %v60_v17 = vsel %vm57_vm3, %v59_v11, %v55_v14  ;;  %84 = vpow2.f32 %v38_v22 }
  0x16   :  { %73 = vpush %v60_v17 }
  0x1a   :  { %v83_v23 = vpop.eup %82 }
  0x1b   :  { %v85_v24 = vpop.eup %84 }
  0x1c   :  { %v40_v25 = vadd.f32 %v85_v24, %v83_v23 }
  0x1e   :  { %41 = vadd.xlane.f32.xlu0 %v40_v25 }
  0x47   :  { %s74_s0 = spop %73 }
  0x48   :  { %v62_v29 = vstv %s74_s0 }
  0x91   :  { %v42_v26 = vpop.xlane.xlu0 %41 }
  0x92   :  { %v43_v27 = vmul.f32 0.00390625, %v42_v26 }
  0x94   :  { %86 = vlog2.f32 %v43_v27 }
  0x9a   :  { %v87_v28 = vpop.eup %86 }
  0x9b   :  { %v45_v30 = vmul.f32 0.6931472, %v87_v28 }
  0x9d   :  { %v63_v31 = vmul.f32 %v62_v29, %v45_v30 }
  0x9f   :  { %v64_v32 = vmul.f32 1.442695, %v63_v31 }
  0xa1   :  { %88 = vpow2.f32 %v64_v32 }
  0xa7   :  { %v89_v33 = vpop.eup %88 }
  0xa8   :  { %67 = vst.msk [vmem:[%s143_s2] sm:$0xff] %vm66_vm4, %v89_v33 }
  0xa9   :  { %72 = vsyncpa [#allocation5], 1 }

</bundles_post_ra>
